<compile_context>
chip_gen: v6e
topology: v6e:2x2x1
jax: 0.10.0
libtpu: 0.0.40
codegen_flags: <defaults>
</compile_context>

<pallas_src>
import functools
import math

import jax
import jax.numpy as jnp
from jax import lax
from jax.experimental import pallas as pl
from jax.experimental.pallas import tpu as pltpu


# ----------------------------------------------------------------------------
# Fused Pallas kernel: Bb batch elements end-to-end, everything VMEM-resident.
# ----------------------------------------------------------------------------
def _fused_forecast_kernel(x_ref, we_ref, be_ref, wp_ref, bp_ref,
                           wo_ref, bo_ref, o_ref, *, n_vals, bb):
    """Shapes (per grid step):
      x_ref  : [Bb, F, L]    concat(values, time-marks) on the feature axis,
                             time on lanes, f32
      we_ref : [D, F]        embedding weight (transposed), compute dtype
      be_ref : [D, 1]        embedding bias, f32
      wp_ref : [L, T]        predict_linear weight, LoRA pre-folded
      bp_ref : [1, T]        predict_linear bias, f32
      wo_ref : [c_out, D]    projection weight (transposed), LoRA pre-folded
      bo_ref : [c_out, 1]    projection bias, f32
      o_ref  : [Bb, c_out, T]  lane-dense output (wrapper -> [B, T, c_out])
    """
    cdt = we_ref.dtype                       # MXU operand dtype (f32 or bf16)
    f_dim = x_ref.shape[1]

    # Feature rows [0, n_vals) are raw values (to be normalized); the rest are
    # time-mark features that pass straight into the embedding.
    is_val = lax.broadcasted_iota(jnp.int32, (f_dim, 1), 0) < n_vals

    # Static loop over the batch block: amortizes the per-grid-step overhead
    # while keeping only one batch worth of f32 intermediates live in VMEM.
    for b in range(bb):
        xb = x_ref[b].astype(jnp.float32)                    # [F, L]

        # --- non-stationary normalization over time (stats stay f32) --------
        mean_f = jnp.mean(xb, axis=-1, keepdims=True)        # [F, 1]
        xc = xb - mean_f
        var_f = jnp.mean(xc * xc, axis=-1, keepdims=True)    # [F, 1]
        inv_f = lax.rsqrt(var_f + 1e-5)                      # EUP, not VPU div
        shift = jnp.where(is_val, mean_f, 0.0)
        scale = jnp.where(is_val, inv_f, 1.0)
        xn = ((xb - shift) * scale).astype(cdt)              # [F, L]

        # --- embedding: one matmul over merged (value, mark) features -------
        # TODO(synk): base TimesNet's DataEmbedding (TokenEmbedding circular
        # Conv1d + positional/temporal embedding) lives in the un-provided
        # base_model; a linear stand-in over (value, mark) features is used.
        enc_t = (jnp.dot(we_ref[...], xn,
                         preferred_element_type=jnp.float32)
                 + be_ref[...])                              # [D, L] f32

        # --- predict_linear along time: rows D, lanes T (lane-dense) --------
        pred_t = (jnp.dot(enc_t.astype(cdt), wp_ref[...],
                          preferred_element_type=jnp.float32)
                  + bp_ref[...])                             # [D, T] f32

        # TODO(synk): the TimesBlock stack (FFT period detection + Inception
        # 2-D convs + LayerNorm) is internal to the un-provided base_model and
        # is not reproduced here.

        # --- projection: [c_out, D] @ [D, T] -> full-K depth, T-wide lanes ---
        proj_t = (jnp.dot(wo_ref[...], pred_t.astype(cdt),
                          preferred_element_type=jnp.float32)
                  + bo_ref[...])                             # [c_out, T] f32

        # --- de-normalization epilogue (requires c_out == enc_in) -----------
        std_v = jnp.sqrt(var_f[:n_vals] + 1e-5)              # [c_out, 1]
        o_ref[b] = (proj_t * std_v + mean_f[:n_vals]).astype(o_ref.dtype)


def lora_timesnet_forward(params, x_enc, x_mark_enc, x_dec, x_mark_dec, *,
                          scaling, compute_dtype=jnp.float32, block_batch=8,
                          vmem_limit_bytes=48 * 1024 * 1024):
    """Full LoRATimesNet forecast forward. x_dec / x_mark_dec are accepted for
    signature parity with the PyTorch module but unused in the TimesNet
    long-term-forecast path."""
    del x_dec, x_mark_dec
    B, L, C = x_enc.shape
    Mk = x_mark_enc.shape[-1]
    F = C + Mk
    D = params["emb_w"].shape[1]
    T = params["pred_w"].shape[1]                     # seq_len + pred_len
    c_out = params["proj_w"].shape[1]
    assert c_out == C, "de-normalization assumes c_out == enc_in"

    f32 = jnp.float32
    # Fold the frozen LoRA factors into the base weights once (inference-time
    # merge; identical to the factored x @ A @ B * scaling form).
    pred_w_eff = (params["pred_w"]
                  + scaling * (params["pred_lora_A"] @ params["pred_lora_B"]))  # [L, T]
    proj_w_eff = (params["proj_w"]
                  + scaling * (params["proj_lora_A"] @ params["proj_lora_B"]))  # [D, c_out]

    we = jnp.transpose(params["emb_w"]).astype(compute_dtype)     # [D, F]
    be = params["emb_b"].reshape(D, 1).astype(f32)
    wp = pred_w_eff.astype(compute_dtype)                         # [L, T]
    bp = params["pred_b"].reshape(1, T).astype(f32)
    wo = jnp.transpose(proj_w_eff).astype(compute_dtype)          # [c_out, D]
    bo = params["proj_b"].reshape(c_out, 1).astype(f32)

    # Inputs stay f32 (normalization / de-norm stats at full precision); only
    # MXU operands are cast inside the kernel.  Merge value + mark features and
    # pre-transpose the tiny activation so time sits on lanes.
    x_all = jnp.concatenate([x_enc.astype(f32), x_mark_enc.astype(f32)],
                            axis=-1)                              # [B, L, F]
    x_all_t = jnp.transpose(x_all, (0, 2, 1))                     # [B, F, L]

    # Batch-block size: amortizes the ~0.35 us per-grid-step overhead.  VMEM
    # per step stays small (per-batch loop), so Bb ~ 8-12 on v7x (64 MiB VMEM)
    # and ~16-24 on v5e/v6e (128 MiB) are fine; on v7x keep cdiv(B, Bb) >= 2
    # so both TensorCores get grid steps.
    bb = max(1, min(block_batch, B))
    n_steps = pl.cdiv(B, bb)
    b_pad = n_steps * bb
    if b_pad != B:
        x_all_t = jnp.pad(x_all_t, ((0, b_pad - B), (0, 0), (0, 0)))

    kernel = functools.partial(_fused_forecast_kernel, n_vals=C, bb=bb)

    out_t = pl.pallas_call(
        kernel,
        out_shape=jax.ShapeDtypeStruct((b_pad, c_out, T), f32),
        grid_spec=pltpu.PrefetchScalarGridSpec(
            num_scalar_prefetch=0,
            grid=(n_steps,),
            in_specs=[
                pl.BlockSpec((bb, F, L), lambda i: (i, 0, 0)),
                pl.BlockSpec((D, F), lambda i: (0, 0)),
                pl.BlockSpec((D, 1), lambda i: (0, 0)),
                pl.BlockSpec((L, T), lambda i: (0, 0)),
                pl.BlockSpec((1, T), lambda i: (0, 0)),
                pl.BlockSpec((c_out, D), lambda i: (0, 0)),
                pl.BlockSpec((c_out, 1), lambda i: (0, 0)),
            ],
            out_specs=pl.BlockSpec((bb, c_out, T), lambda i: (i, 0, 0)),
        ),
        compiler_params=pltpu.CompilerParams(
            dimension_semantics=("parallel",),          # shard steps over TCs
            vmem_limit_bytes=vmem_limit_bytes),
    )(x_all_t, we, be, wp, bp, wo, bo)

    # Kernel emits the lane-dense [B, c_out, T] layout; restore [B, T, c_out].
    return jnp.transpose(out_t[:B], (0, 2, 1))


# ----------------------------------------------------------------------------
# Parameter initialization (deterministic, mirrors the PyTorch __init__s)
# ----------------------------------------------------------------------------
def torch_linear_init(key, in_features, out_features):
    """nn.Linear default init; returns (W^T [in, out], b [out])."""
    kw, kb = jax.random.split(key)
    bound_w = 1.0 / math.sqrt(in_features)            # kaiming_uniform(a=sqrt(5))
    w = jax.random.uniform(kw, (out_features, in_features),
                           minval=-bound_w, maxval=bound_w, dtype=jnp.float32)
    b = jax.random.uniform(kb, (out_features,),
                           minval=-bound_w, maxval=bound_w, dtype=jnp.float32)
    return jnp.transpose(w), b


def lora_layer_init(key, in_features, out_features, rank):
    """LoRALayer init: lora_A kaiming_uniform(a=sqrt(5)) (fan_in=rank), lora_B zeros."""
    bound_a = 1.0 / math.sqrt(rank)
    lora_a = jax.random.uniform(key, (in_features, rank),
                                minval=-bound_a, maxval=bound_a, dtype=jnp.float32)
    lora_b = jnp.zeros((rank, out_features), dtype=jnp.float32)
    return lora_a, lora_b


def make_params(key, *, enc_in, mark_in, d_model, seq_len, pred_len, c_out, rank):
    keys = jax.random.split(key, 5)
    p = {}
    # (simplified) DataEmbedding: linear over concat(value, time-mark) features
    p["emb_w"], p["emb_b"] = torch_linear_init(keys[0], enc_in + mark_in, d_model)
    # predict_linear: Linear(seq_len -> seq_len + pred_len), LoRA-wrapped
    p["pred_w"], p["pred_b"] = torch_linear_init(keys[1], seq_len, seq_len + pred_len)
    p["pred_lora_A"], p["pred_lora_B"] = lora_layer_init(keys[2], seq_len,
                                                         seq_len + pred_len, rank)
    # projection: Linear(d_model -> c_out), LoRA-wrapped
    p["proj_w"], p["proj_b"] = torch_linear_init(keys[3], d_model, c_out)
    p["proj_lora_A"], p["proj_lora_B"] = lora_layer_init(keys[4], d_model, c_out, rank)
    return p


# ----------------------------------------------------------------------------
# Pure-JAX reference with the FACTORED LoRA form (matches the PyTorch module)
# ----------------------------------------------------------------------------
def reference_forward(params, x_enc, x_mark_enc, *, scaling):
    means = jnp.mean(x_enc, axis=1, keepdims=True)
    stdev = jnp.sqrt(jnp.var(x_enc, axis=1, keepdims=True) + 1e-5)
    x = (x_enc - means) / stdev
    emb_in = jnp.concatenate([x, x_mark_enc], axis=-1)
    enc = emb_in @ params["emb_w"] + params["emb_b"]
    pl_in = jnp.transpose(enc, (0, 2, 1))              # [B, D, L]
    pl_out = (pl_in @ params["pred_w"] + params["pred_b"]
              + (pl_in @ params["pred_lora_A"] @ params["pred_lora_B"]) * scaling)
    enc2 = jnp.transpose(pl_out, (0, 2, 1))            # [B, T, D]
    proj = (enc2 @ params["proj_w"] + params["proj_b"]
            + (enc2 @ params["proj_lora_A"] @ params["proj_lora_B"]) * scaling)
    return proj * stdev + means


# ----------------------------------------------------------------------------
if __name__ == "__main__":
    B, seq_len, pred_len, label_len = 2, 8, 4, 4
    enc_in = c_out = 4
    mark_in = 4
    d_model = 64
    rank, alpha = 4, 1.0
    scaling = alpha / rank

    key = jax.random.PRNGKey(0)
    (k_par, k_xe, k_me, k_xd, k_md, k_lb1, k_lb2,
     k_xe3, k_me3) = jax.random.split(key, 9)

    params = make_params(k_par, enc_in=enc_in, mark_in=mark_in, d_model=d_model,
                         seq_len=seq_len, pred_len=pred_len, c_out=c_out, rank=rank)
    # PyTorch inits lora_B to zeros (LoRA contributes nothing); override with
    # nonzero values so the folded-weight kernel is actually verified against
    # the factored x @ A @ B reference.
    params["pred_lora_B"] = 0.1 * jax.random.normal(
        k_lb1, params["pred_lora_B"].shape, dtype=jnp.float32)
    params["proj_lora_B"] = 0.1 * jax.random.normal(
        k_lb2, params["proj_lora_B"].shape, dtype=jnp.float32)

    x_enc = jax.random.normal(k_xe, (B, seq_len, enc_in), dtype=jnp.float32)
    x_mark_enc = jax.random.normal(k_me, (B, seq_len, mark_in), dtype=jnp.float32)
    x_dec = jax.random.normal(k_xd, (B, label_len + pred_len, enc_in),
                              dtype=jnp.float32)
    x_mark_dec = jax.random.normal(k_md, (B, label_len + pred_len, mark_in),
                                   dtype=jnp.float32)

    # f32 path + correctness check against the factored-LoRA reference.
    out = lora_timesnet_forward(params, x_enc, x_mark_enc, x_dec, x_mark_dec,
                                scaling=scaling)
    out = jax.block_until_ready(out)
    ref = reference_forward(params, x_enc, x_mark_enc, scaling=scaling)
    assert out.shape == (B, seq_len + pred_len, c_out), out.shape
    assert jnp.allclose(out, ref, atol=2e-3, rtol=2e-3), \
        float(jnp.max(jnp.abs(out - ref)))

    # Odd batch + small batch-block: exercises batch padding and a grid with
    # more than one step.
    x_enc3 = jax.random.normal(k_xe3, (3, seq_len, enc_in), dtype=jnp.float32)
    x_mark3 = jax.random.normal(k_me3, (3, seq_len, mark_in), dtype=jnp.float32)
    out3 = lora_timesnet_forward(params, x_enc3, x_mark3, None, None,
                                 scaling=scaling, block_batch=2)
    out3 = jax.block_until_ready(out3)
    ref3 = reference_forward(params, x_enc3, x_mark3, scaling=scaling)
    assert out3.shape == (3, seq_len + pred_len, c_out), out3.shape
    assert jnp.allclose(out3, ref3, atol=2e-3, rtol=2e-3), \
        float(jnp.max(jnp.abs(out3 - ref3)))

    # bf16 MXU-operand path (v6e/v7x native; stats + accumulation stay f32) —
    # tolerance-asserted against the f32 factored-LoRA reference.
    out_bf16 = lora_timesnet_forward(params, x_enc, x_mark_enc, x_dec, x_mark_dec,
                                     scaling=scaling, compute_dtype=jnp.bfloat16)
    out_bf16 = jax.block_until_ready(out_bf16)
    assert out_bf16.shape == (B, seq_len + pred_len, c_out)
    assert bool(jnp.all(jnp.isfinite(out_bf16)))
    assert jnp.allclose(out_bf16, ref, atol=5e-2, rtol=5e-2), \
        float(jnp.max(jnp.abs(out_bf16 - ref)))

    print("KERNEL_OK")
</pallas_src>

<mosaic_0001>
module attributes {stable_mosaic.version = 11 : i64} {
  func.func @_fused_forecast_kernel(%arg0: i32, %arg1: memref<2x8x8xf32, #tpu.memory_space<vmem>>, %arg2: memref<64x8xf32, #tpu.memory_space<vmem>>, %arg3: memref<64x1xf32, #tpu.memory_space<vmem>>, %arg4: memref<8x12xf32, #tpu.memory_space<vmem>>, %arg5: memref<1x12xf32, #tpu.memory_space<vmem>>, %arg6: memref<4x64xf32, #tpu.memory_space<vmem>>, %arg7: memref<4x1xf32, #tpu.memory_space<vmem>>, %arg8: memref<2x4x12xf32, #tpu.memory_space<vmem>>) attributes {dimension_semantics = [#tpu.dimension_semantics<parallel>], iteration_bounds = array<i64: 1>, scalar_prefetch = 0 : i64, scratch_operands = 0 : i64, tpu.core_type = #tpu.core_type<tc>, window_params = [{transform_indices = @transform_0, window_bounds = array<i64: 2, 8, 8>}, {pipeline_mode = #tpu.pipeline_mode<synchronous>, transform_indices = @transform_1, window_bounds = array<i64: 64, 8>}, {pipeline_mode = #tpu.pipeline_mode<synchronous>, transform_indices = @transform_2, window_bounds = array<i64: 64, 1>}, {pipeline_mode = #tpu.pipeline_mode<synchronous>, transform_indices = @transform_3, window_bounds = array<i64: 8, 12>}, {pipeline_mode = #tpu.pipeline_mode<synchronous>, transform_indices = @transform_4, window_bounds = array<i64: 1, 12>}, {pipeline_mode = #tpu.pipeline_mode<synchronous>, transform_indices = @transform_5, window_bounds = array<i64: 4, 64>}, {pipeline_mode = #tpu.pipeline_mode<synchronous>, transform_indices = @transform_6, window_bounds = array<i64: 4, 1>}, {transform_indices = @transform_7, window_bounds = array<i64: 2, 4, 12>}]} {
    %0 = tpu.iota {dimensions = array<i32: 0>} : vector<8x1xi32>
    %c4_i32 = arith.constant 4 : i32
    %1 = vector.broadcast %c4_i32 : i32 to vector<8x1xi32>
    %2 = arith.cmpi slt, %0, %1 : vector<8x1xi32>
    %c0 = arith.constant 0 : index
    %c0_0 = arith.constant 0 : index
    %c0_1 = arith.constant 0 : index
    %3 = vector.load %arg1[%c0, %c0_0, %c0_1] : memref<2x8x8xf32, #tpu.memory_space<vmem>>, vector<1x8x8xf32>
    %4 = vector.shape_cast %3 : vector<1x8x8xf32> to vector<8x8xf32>
    %cst = arith.constant dense<0.000000e+00> : vector<8xf32>
    %5 = vector.multi_reduction <add>, %4, %cst [1] : vector<8x8xf32> to vector<8xf32>
    %6 = vector.shape_cast %5 : vector<8xf32> to vector<8x1xf32>
    %cst_2 = arith.constant 8.000000e+00 : f32
    %7 = vector.broadcast %cst_2 : f32 to vector<8x1xf32>
    %8 = arith.divf %6, %7 : vector<8x1xf32>
    %9 = vector.broadcast %8 : vector<8x1xf32> to vector<8x8xf32>
    %10 = arith.subf %4, %9 : vector<8x8xf32>
    %11 = arith.mulf %10, %10 : vector<8x8xf32>
    %cst_3 = arith.constant dense<0.000000e+00> : vector<8xf32>
    %12 = vector.multi_reduction <add>, %11, %cst_3 [1] : vector<8x8xf32> to vector<8xf32>
    %13 = vector.shape_cast %12 : vector<8xf32> to vector<8x1xf32>
    %cst_4 = arith.constant 8.000000e+00 : f32
    %14 = vector.broadcast %cst_4 : f32 to vector<8x1xf32>
    %15 = arith.divf %13, %14 : vector<8x1xf32>
    %cst_5 = arith.constant 9.99999974E-6 : f32
    %16 = vector.broadcast %cst_5 : f32 to vector<8x1xf32>
    %17 = arith.addf %15, %16 : vector<8x1xf32>
    %18 = math.rsqrt %17 : vector<8x1xf32>
    %cst_6 = arith.constant 0.000000e+00 : f32
    %19 = vector.broadcast %cst_6 : f32 to vector<8x1xf32>
    %20 = arith.select %2, %8, %19 : vector<8x1xi1>, vector<8x1xf32>
    %cst_7 = arith.constant 1.000000e+00 : f32
    %21 = vector.broadcast %cst_7 : f32 to vector<8x1xf32>
    %22 = arith.select %2, %18, %21 : vector<8x1xi1>, vector<8x1xf32>
    %23 = vector.broadcast %20 : vector<8x1xf32> to vector<8x8xf32>
    %24 = arith.subf %4, %23 : vector<8x8xf32>
    %25 = vector.broadcast %22 : vector<8x1xf32> to vector<8x8xf32>
    %26 = arith.mulf %24, %25 : vector<8x8xf32>
    %c0_8 = arith.constant 0 : index
    %c0_9 = arith.constant 0 : index
    %27 = vector.load %arg2[%c0_8, %c0_9] : memref<64x8xf32, #tpu.memory_space<vmem>>, vector<64x8xf32>
    %cst_10 = arith.constant dense<0.000000e+00> : vector<64x8xf32>
    %28 = tpu.matmul %27, %26, %cst_10 {dimension_numbers = #tpu.dot_dimension_numbers<[1], [0], [0], [1], [0, 0, 1, 1], [], []>} : vector<64x8xf32>, vector<8x8xf32>, vector<64x8xf32> -> vector<64x8xf32>
    %c0_11 = arith.constant 0 : index
    %c0_12 = arith.constant 0 : index
    %29 = vector.load %arg3[%c0_11, %c0_12] : memref<64x1xf32, #tpu.memory_space<vmem>>, vector<64x1xf32>
    %30 = vector.broadcast %29 : vector<64x1xf32> to vector<64x8xf32>
    %31 = arith.addf %28, %30 : vector<64x8xf32>
    %c0_13 = arith.constant 0 : index
    %c0_14 = arith.constant 0 : index
    %32 = vector.load %arg4[%c0_13, %c0_14] : memref<8x12xf32, #tpu.memory_space<vmem>>, vector<8x12xf32>
    %cst_15 = arith.constant dense<0.000000e+00> : vector<64x12xf32>
    %33 = tpu.matmul %31, %32, %cst_15 {dimension_numbers = #tpu.dot_dimension_numbers<[1], [0], [0], [1], [0, 0, 1, 1], [], []>} : vector<64x8xf32>, vector<8x12xf32>, vector<64x12xf32> -> vector<64x12xf32>
    %c0_16 = arith.constant 0 : index
    %c0_17 = arith.constant 0 : index
    %34 = vector.load %arg5[%c0_16, %c0_17] : memref<1x12xf32, #tpu.memory_space<vmem>>, vector<1x12xf32>
    %35 = vector.broadcast %34 : vector<1x12xf32> to vector<64x12xf32>
    %36 = arith.addf %33, %35 : vector<64x12xf32>
    %c0_18 = arith.constant 0 : index
    %c0_19 = arith.constant 0 : index
    %37 = vector.load %arg6[%c0_18, %c0_19] : memref<4x64xf32, #tpu.memory_space<vmem>>, vector<4x64xf32>
    %cst_20 = arith.constant dense<0.000000e+00> : vector<4x12xf32>
    %38 = tpu.matmul %37, %36, %cst_20 {dimension_numbers = #tpu.dot_dimension_numbers<[1], [0], [0], [1], [0, 0, 1, 1], [], []>} : vector<4x64xf32>, vector<64x12xf32>, vector<4x12xf32> -> vector<4x12xf32>
    %c0_21 = arith.constant 0 : index
    %c0_22 = arith.constant 0 : index
    %39 = vector.load %arg7[%c0_21, %c0_22] : memref<4x1xf32, #tpu.memory_space<vmem>>, vector<4x1xf32>
    %40 = vector.broadcast %39 : vector<4x1xf32> to vector<4x12xf32>
    %41 = arith.addf %38, %40 : vector<4x12xf32>
    %42 = vector.extract_strided_slice %15 {offsets = [0, 0], sizes = [4, 1], strides = [1, 1]} : vector<8x1xf32> to vector<4x1xf32>
    %cst_23 = arith.constant 9.99999974E-6 : f32
    %43 = vector.broadcast %cst_23 : f32 to vector<4x1xf32>
    %44 = arith.addf %42, %43 : vector<4x1xf32>
    %45 = math.sqrt %44 : vector<4x1xf32>
    %46 = vector.broadcast %45 : vector<4x1xf32> to vector<4x12xf32>
    %47 = arith.mulf %41, %46 : vector<4x12xf32>
    %48 = vector.extract_strided_slice %8 {offsets = [0, 0], sizes = [4, 1], strides = [1, 1]} : vector<8x1xf32> to vector<4x1xf32>
    %49 = vector.broadcast %48 : vector<4x1xf32> to vector<4x12xf32>
    %50 = arith.addf %47, %49 : vector<4x12xf32>
    %c0_24 = arith.constant 0 : index
    %c0_25 = arith.constant 0 : index
    %c0_26 = arith.constant 0 : index
    %51 = vector.load %arg8[%c0_24, %c0_25, %c0_26] : memref<2x4x12xf32, #tpu.memory_space<vmem>>, vector<1x4x12xf32>
    %52 = vector.shape_cast %51 : vector<1x4x12xf32> to vector<4x12xf32>
    %53 = vector.shape_cast %50 : vector<4x12xf32> to vector<1x4x12xf32>
    tpu.vector_store %arg8[%c0_24, %c0_25, %c0_26], %53 {strides = array<i32>} : memref<2x4x12xf32, #tpu.memory_space<vmem>>, vector<1x4x12xf32>,
    %c1 = arith.constant 1 : index
    %c0_27 = arith.constant 0 : index
    %c0_28 = arith.constant 0 : index
    %54 = vector.load %arg1[%c1, %c0_27, %c0_28] : memref<2x8x8xf32, #tpu.memory_space<vmem>>, vector<1x8x8xf32>
    %55 = vector.shape_cast %54 : vector<1x8x8xf32> to vector<8x8xf32>
    %cst_29 = arith.constant dense<0.000000e+00> : vector<8xf32>
    %56 = vector.multi_reduction <add>, %55, %cst_29 [1] : vector<8x8xf32> to vector<8xf32>
    %57 = vector.shape_cast %56 : vector<8xf32> to vector<8x1xf32>
    %cst_30 = arith.constant 8.000000e+00 : f32
    %58 = vector.broadcast %cst_30 : f32 to vector<8x1xf32>
    %59 = arith.divf %57, %58 : vector<8x1xf32>
    %60 = vector.broadcast %59 : vector<8x1xf32> to vector<8x8xf32>
    %61 = arith.subf %55, %60 : vector<8x8xf32>
    %62 = arith.mulf %61, %61 : vector<8x8xf32>
    %cst_31 = arith.constant dense<0.000000e+00> : vector<8xf32>
    %63 = vector.multi_reduction <add>, %62, %cst_31 [1] : vector<8x8xf32> to vector<8xf32>
    %64 = vector.shape_cast %63 : vector<8xf32> to vector<8x1xf32>
    %cst_32 = arith.constant 8.000000e+00 : f32
    %65 = vector.broadcast %cst_32 : f32 to vector<8x1xf32>
    %66 = arith.divf %64, %65 : vector<8x1xf32>
    %cst_33 = arith.constant 9.99999974E-6 : f32
    %67 = vector.broadcast %cst_33 : f32 to vector<8x1xf32>
    %68 = arith.addf %66, %67 : vector<8x1xf32>
    %69 = math.rsqrt %68 : vector<8x1xf32>
    %cst_34 = arith.constant 0.000000e+00 : f32
    %70 = vector.broadcast %cst_34 : f32 to vector<8x1xf32>
    %71 = arith.select %2, %59, %70 : vector<8x1xi1>, vector<8x1xf32>
    %cst_35 = arith.constant 1.000000e+00 : f32
    %72 = vector.broadcast %cst_35 : f32 to vector<8x1xf32>
    %73 = arith.select %2, %69, %72 : vector<8x1xi1>, vector<8x1xf32>
    %74 = vector.broadcast %71 : vector<8x1xf32> to vector<8x8xf32>
    %75 = arith.subf %55, %74 : vector<8x8xf32>
    %76 = vector.broadcast %73 : vector<8x1xf32> to vector<8x8xf32>
    %77 = arith.mulf %75, %76 : vector<8x8xf32>
    %c0_36 = arith.constant 0 : index
    %c0_37 = arith.constant 0 : index
    %78 = vector.load %arg2[%c0_36, %c0_37] : memref<64x8xf32, #tpu.memory_space<vmem>>, vector<64x8xf32>
    %cst_38 = arith.constant dense<0.000000e+00> : vector<64x8xf32>
    %79 = tpu.matmul %78, %77, %cst_38 {dimension_numbers = #tpu.dot_dimension_numbers<[1], [0], [0], [1], [0, 0, 1, 1], [], []>} : vector<64x8xf32>, vector<8x8xf32>, vector<64x8xf32> -> vector<64x8xf32>
    %c0_39 = arith.constant 0 : index
    %c0_40 = arith.constant 0 : index
    %80 = vector.load %arg3[%c0_39, %c0_40] : memref<64x1xf32, #tpu.memory_space<vmem>>, vector<64x1xf32>
    %81 = vector.broadcast %80 : vector<64x1xf32> to vector<64x8xf32>
    %82 = arith.addf %79, %81 : vector<64x8xf32>
    %c0_41 = arith.constant 0 : index
    %c0_42 = arith.constant 0 : index
    %83 = vector.load %arg4[%c0_41, %c0_42] : memref<8x12xf32, #tpu.memory_space<vmem>>, vector<8x12xf32>
    %cst_43 = arith.constant dense<0.000000e+00> : vector<64x12xf32>
    %84 = tpu.matmul %82, %83, %cst_43 {dimension_numbers = #tpu.dot_dimension_numbers<[1], [0], [0], [1], [0, 0, 1, 1], [], []>} : vector<64x8xf32>, vector<8x12xf32>, vector<64x12xf32> -> vector<64x12xf32>
    %c0_44 = arith.constant 0 : index
    %c0_45 = arith.constant 0 : index
    %85 = vector.load %arg5[%c0_44, %c0_45] : memref<1x12xf32, #tpu.memory_space<vmem>>, vector<1x12xf32>
    %86 = vector.broadcast %85 : vector<1x12xf32> to vector<64x12xf32>
    %87 = arith.addf %84, %86 : vector<64x12xf32>
    %c0_46 = arith.constant 0 : index
    %c0_47 = arith.constant 0 : index
    %88 = vector.load %arg6[%c0_46, %c0_47] : memref<4x64xf32, #tpu.memory_space<vmem>>, vector<4x64xf32>
    %cst_48 = arith.constant dense<0.000000e+00> : vector<4x12xf32>
    %89 = tpu.matmul %88, %87, %cst_48 {dimension_numbers = #tpu.dot_dimension_numbers<[1], [0], [0], [1], [0, 0, 1, 1], [], []>} : vector<4x64xf32>, vector<64x12xf32>, vector<4x12xf32> -> vector<4x12xf32>
    %c0_49 = arith.constant 0 : index
    %c0_50 = arith.constant 0 : index
    %90 = vector.load %arg7[%c0_49, %c0_50] : memref<4x1xf32, #tpu.memory_space<vmem>>, vector<4x1xf32>
    %91 = vector.broadcast %90 : vector<4x1xf32> to vector<4x12xf32>
    %92 = arith.addf %89, %91 : vector<4x12xf32>
    %93 = vector.extract_strided_slice %66 {offsets = [0, 0], sizes = [4, 1], strides = [1, 1]} : vector<8x1xf32> to vector<4x1xf32>
    %cst_51 = arith.constant 9.99999974E-6 : f32
    %94 = vector.broadcast %cst_51 : f32 to vector<4x1xf32>
    %95 = arith.addf %93, %94 : vector<4x1xf32>
    %96 = math.sqrt %95 : vector<4x1xf32>
    %97 = vector.broadcast %96 : vector<4x1xf32> to vector<4x12xf32>
    %98 = arith.mulf %92, %97 : vector<4x12xf32>
    %99 = vector.extract_strided_slice %59 {offsets = [0, 0], sizes = [4, 1], strides = [1, 1]} : vector<8x1xf32> to vector<4x1xf32>
    %100 = vector.broadcast %99 : vector<4x1xf32> to vector<4x12xf32>
    %101 = arith.addf %98, %100 : vector<4x12xf32>
    %c1_52 = arith.constant 1 : index
    %c0_53 = arith.constant 0 : index
    %c0_54 = arith.constant 0 : index
    %102 = vector.load %arg8[%c1_52, %c0_53, %c0_54] : memref<2x4x12xf32, #tpu.memory_space<vmem>>, vector<1x4x12xf32>
    %103 = vector.shape_cast %102 : vector<1x4x12xf32> to vector<4x12xf32>
    %104 = vector.shape_cast %101 : vector<4x12xf32> to vector<1x4x12xf32>
    tpu.vector_store %arg8[%c1_52, %c0_53, %c0_54], %104 {strides = array<i32>} : memref<2x4x12xf32, #tpu.memory_space<vmem>>, vector<1x4x12xf32>,
    return
  }
  func.func @transform_0(%arg0: i32) -> (i32, i32, i32) {
    %c0_i32 = arith.constant 0 : i32
    %c0_i32_0 = arith.constant 0 : i32
    %c0_i32_1 = arith.constant 0 : i32
    return %arg0, %c0_i32, %c0_i32_0 : i32, i32, i32
  }
  func.func @transform_1(%arg0: i32) -> (i32, i32) {
    %c0_i32 = arith.constant 0 : i32
    %c0_i32_0 = arith.constant 0 : i32
    %c0_i32_1 = arith.constant 0 : i32
    return %c0_i32, %c0_i32_0 : i32, i32
  }
  func.func @transform_2(%arg0: i32) -> (i32, i32) {
    %c0_i32 = arith.constant 0 : i32
    %c0_i32_0 = arith.constant 0 : i32
    %c0_i32_1 = arith.constant 0 : i32
    return %c0_i32, %c0_i32_0 : i32, i32
  }
  func.func @transform_3(%arg0: i32) -> (i32, i32) {
    %c0_i32 = arith.constant 0 : i32
    %c0_i32_0 = arith.constant 0 : i32
    %c0_i32_1 = arith.constant 0 : i32
    return %c0_i32, %c0_i32_0 : i32, i32
  }
  func.func @transform_4(%arg0: i32) -> (i32, i32) {
    %c0_i32 = arith.constant 0 : i32
    %c0_i32_0 = arith.constant 0 : i32
    %c0_i32_1 = arith.constant 0 : i32
    return %c0_i32, %c0_i32_0 : i32, i32
  }
  func.func @transform_5(%arg0: i32) -> (i32, i32) {
    %c0_i32 = arith.constant 0 : i32
    %c0_i32_0 = arith.constant 0 : i32
    %c0_i32_1 = arith.constant 0 : i32
    return %c0_i32, %c0_i32_0 : i32, i32
  }
  func.func @transform_6(%arg0: i32) -> (i32, i32) {
    %c0_i32 = arith.constant 0 : i32
    %c0_i32_0 = arith.constant 0 : i32
    %c0_i32_1 = arith.constant 0 : i32
    return %c0_i32, %c0_i32_0 : i32, i32
  }
  func.func @transform_7(%arg0: i32) -> (i32, i32, i32) {
    %c0_i32 = arith.constant 0 : i32
    %c0_i32_0 = arith.constant 0 : i32
    %c0_i32_1 = arith.constant 0 : i32
    return %arg0, %c0_i32, %c0_i32_0 : i32, i32, i32
  }
}

</mosaic_0001>

<bundles_post_ra>
// kernel: tpu_custom_call.1
= control target key start
LH: loop header
LB: loop body
LE: loop exit
PB: predicated region body
PF: predicated region fallthrough
CT: control target
= control target key end

     0   :  { %vm31_vm0 = vcmask 64512   ;;  %s1371_s0 = inlined_call_operand.vmem [shape: f32[2,8,8], index: 0, kind: input, shape index: {}]   ;;  %s1372_s1 = inlined_call_operand.vmem [shape: f32[64,8], index: 1, kind: input, shape index: {}]   ;;  %s1373_s2 = inlined_call_operand.vmem [shape: f32[64,1], index: 2, kind: input, shape index: {}]   ;;  %s1374_s3 = inlined_call_operand.vmem [shape: f32[8,12], index: 3, kind: input, shape index: {}]   ;;  %s1375_s4 = inlined_call_operand.vmem [shape: f32[1,12], index: 4, kind: input, shape index: {}]   ;;  %s1376_s5 = inlined_call_operand.vmem [shape: f32[4,64], index: 5, kind: input, shape index: {}]   ;;  %s1377_s6 = inlined_call_operand.vmem [shape: f32[4,1], index: 6, kind: input, shape index: {}]   ;;  %s1378_s7 = inlined_call_operand.hbm [shape: f32[2,4,12], index: 7, kind: output, shape index: {}]  }
   0x1   :  { %v1178_v0 = vld [vmem:[%s1371_s0] sm:$0xff]  ;;  %v1183_v1 = vld [vmem:[%s1371_s0 + $0x8] sm:$0xff] }
   0x2   :  { %12 = vsyncpa [#allocation3], 0  ;;  %v32_v2 = vsel %vm31_vm0, %v1178_v0, 0.0  ;;  %v465_v3 = vsel %vm31_vm0, %v1183_v1, 0.0  ;;  %v57_v4 = vld [vmem:[%s1373_s2] sm:$0xff]  ;;  %v1129_v5 = vmov 0   ;;  %v27_v34 = vlaneseq }
   0x3   :  { %33 = vadd.xlane.f32.xlu0 %v32_v2  ;;  %466 = vadd.xlane.f32.xlu1 %v465_v3  ;;  %v61_v16 = vld [vmem:[%s1373_s2 + $0x20] sm:$0xff]  ;;  %v490_v17 = vld [vmem:[%s1373_s2 + $0x8] sm:$0xff]  ;;  %v492_v19 = vld [vmem:[%s1373_s2 + $0x18] sm:$0xff]  ;;  %vm1131_vm4 = vmmov 0   ;;  %vm378_vm5 = vcmask 523264   ;;  %vm461_vm6 = vcmask 93184  }
   0x4   :  { %1101 = vset.pattern.permute.xlu1 %v1129_v5  ;;  %1102 = vset.pattern.permute.xlu0 %v1129_v5  ;;  %v1211_v18 = vld [vmem:[%s1372_s1] sm:$0xff]  ;;  %v494_v20 = vld [vmem:[%s1373_s2 + $0x28] sm:$0xff]  ;;  %v496_v21 = vld [vmem:[%s1373_s2 + $0x38] sm:$0xff]  ;;  %v28_v35 = vshrl.u32 %v27_v34, 7 }
   0x5   :  { %1003 = vmatprep.mubr.msk.f32.mxu0 %vm31_vm0, %v1211_v18  ;;  %v804_v22 = vld [vmem:[%s1377_s6] sm:$0xf]  ;;  %v59_v23 = vld [vmem:[%s1373_s2 + $0x10] sm:$0xff]  ;;  %v50_v47 = vld [vmem:[%s1372_s1 + $0x8] sm:$0xff] }
   0x6   :  { %v1233_v24 = vld [vmem:[%s1374_s3] sm:$0xff]  ;;  %v63_v25 = vld [vmem:[%s1373_s2 + $0x30] sm:$0xff]  ;;  %vm29_vm1 = vcmp.lt.s32.totalorder %v28_v35, 4  ;;  %v52_v52 = vld [vmem:[%s1372_s1 + $0x18] sm:$0xff] }
   0x7   :  { %1015 = vmatprep.subr.mxu1 %v1233_v24  ;;  %v372_v26 = vld [vmem:[%s1377_s6] sm:$0xf]  ;;  %v51_v50 = vld [vmem:[%s1372_s1 + $0x10] sm:$0xff]  ;;  %v54_v54 = vld [vmem:[%s1372_s1 + $0x28] sm:$0xff] }
   0x8   :  { %1016 = vmatpush3.msra.mxu1 %v1233_v24  ;;  %v53_v53 = vld [vmem:[%s1372_s1 + $0x20] sm:$0xff]  ;;  %v55_v55 = vld [vmem:[%s1372_s1 + $0x30] sm:$0xff]  ;;  %v56_v56 = vld [vmem:[%s1372_s1 + $0x38] sm:$0xff] }
  0x14   :  { %67 = vperm.xlu1 %1101, %v57_v4  }
  0x8c   :  { %v34_v6 = vpop.xlane.xlu0 %33  ;;  %v467_v7 = vpop.xlane.xlu1 %466 }
  0x8d   :  { %v1192_v8 = vmul.f32 0.125, %v34_v6  ;;  %v1194_v9 = vmul.f32 0.125, %v467_v7 }
  0x8f   :  { %v37_v10 = vsub.f32 %v1178_v0, %v1192_v8  ;;  %v469_v11 = vsub.f32 %v1183_v1, %v1194_v9  ;;  %v477_v36 = vsel %vm29_vm1, %v1194_v9, 0.0  ;;  %v45_v37 = vsel %vm29_vm1, %v1192_v8, 0.0 }
  0x90   :  { %v68_v27 = vpop.permute.xlu1 %67  ;;  %v479_v38 = vsub.f32 %v1183_v1, %v477_v36  ;;  %v47_v40 = vsub.f32 %v1178_v0, %v45_v37 }
  0x91   :  { %v38_v12 = vmul.f32 %v37_v10, %v37_v10  ;;  %v470_v13 = vmul.f32 %v469_v11, %v469_v11 }
  0x93   :  { %v39_v14 = vsel %vm31_vm0, %v38_v12, 0.0  ;;  %v471_v15 = vsel %vm31_vm0, %v470_v13, 0.0 }
  0x94   :  { %40 = vadd.xlane.f32.xlu0 %v39_v14  ;;  %472 = vadd.xlane.f32.xlu1 %v471_v15 }
  0xa5   :  { %87 = vperm.xlu1 %1101, %v61_v16  }
  0xa9   :  { %504 = vperm.xlu1 %1101, %v490_v17  }
  0xaa   :  { %72 = vperm.xlu0 %1102, %v490_v17  }
  0xad   :  { %514 = vperm.xlu1 %1101, %v492_v19  }
  0xae   :  { %77 = vperm.xlu0 %1102, %v59_v23  }
  0xb1   :  { %524 = vperm.xlu1 %1101, %v494_v20  }
  0xb2   :  { %82 = vperm.xlu0 %1102, %v492_v19   ;;  %v1130_v19 = vmov 0.0  }
  0xb5   :  { %534 = vperm.xlu1 %1101, %v496_v21  }
  0xb6   :  { %92 = vperm.xlu0 %1102, %v494_v20  }
  0xb9   :  { %807 = vperm.xlu1 %1101, %v804_v22  }
  0xba   :  { %97 = vperm.xlu0 %1102, %v63_v25  }
  0xbe   :  { %102 = vperm.xlu0 %1102, %v496_v21  }
  0xc2   :  { %499 = vperm.xlu0 %1102, %v57_v4  }
  0xc6   :  { %509 = vperm.xlu0 %1102, %v59_v23  }
  0xca   :  { %519 = vperm.xlu0 %1102, %v61_v16  }
  0xce   :  { %529 = vperm.xlu0 %1102, %v63_v25  }
  0xd2   :  { %375 = vperm.xlu0 %1102, %v372_v26   ;;  %v1307_v26 = vld [vmem:[%s1375_s4] ss:$0 sm:$0xff] }
 0x11d   :  { %v41_v28 = vpop.xlane.xlu0 %40  ;;  %v473_v29 = vpop.xlane.xlu1 %472 }
 0x11e   :  { %v42_v30 = vmul.f32 0.125, %v41_v28  ;;  %v474_v31 = vmul.f32 0.125, %v473_v29 }
 0x120   :  { %v43_v32 = vadd.f32 1e-05, %v42_v30  ;;  %v1243_v33 = vadd.f32 1e-05, %v474_v31 }
 0x121   :  { %v88_v7 = vpop.permute.xlu1 %87 }
 0x122   :  { %1103 = vrsqrt.f32 %v43_v32  ;;  %vm454_vm2 = vcmp.eq.f32.partialorder %v43_v32, inf  ;;  %v457_v46 = vand.u32 2147483648, %v43_v32  ;;  %vm456_vm3 = vcmp.eq.f32.partialorder %v43_v32, 0.0 }
 0x123   :  { %1105 = vrsqrt.f32 %v1243_v33  ;;  %vm885_vm7 = vcmp.eq.f32.partialorder %v1243_v33, inf  ;;  %vm887_vm8 = vcmp.eq.f32.partialorder %v1243_v33, 0.0 }
 0x125   :  { %v73_v57 = vpop.permute.xlu0 %72 }
 0x129   :  { %v78_v58 = vpop.permute.xlu0 %77 }
 0x12d   :  { %v83_v59 = vpop.permute.xlu0 %82 }
 0x12f   :  { %v1104_v39 = vpop.eup %1103 }
 0x130   :  { %v1250_v41 = vpop.eup %1105  ;;  %v46_v42 = vsel %vm29_vm1, %v1104_v39, 1.0  ;;  %v453_v43 = vmul.f32 %v1104_v39, %v43_v32 }
 0x131   :  { %v48_v44 = vmul.f32 %v47_v40, %v46_v42  ;;  %v478_v45 = vsel %vm29_vm1, %v1250_v41, 1.0  ;;  %v93_v62 = vpop.permute.xlu0 %92  ;;  %v505_v42 = vpop.permute.xlu1 %504 }
 0x132   :  { %v480_v48 = vmul.f32 %v479_v38, %v478_v45  ;;  %v455_v49 = vsel %vm454_vm2, %v43_v32, %v453_v43 }
 0x133   :  { %1001 = vmatprep.subr.mxu0 %v48_v44  ;;  %v1259_v51 = vsel %vm456_vm3, %v457_v46, %v455_v49  ;;  %v371_v46 = vld [vmem:[%s1376_s5] sm:$0xf] }
 0x134   :  { %1002 = vmatpush3.msra.mxu0 %v48_v44  ;;  %1048 = vmatprep.subr.mxu1 %v480_v48 }
 0x135   :  { %1004 = vmatmul.mubr.msk.f32.vlgmr.msra.gmra.mxu0 %vm31_vm0, %v50_v47  ;;  %v98_v6 = vpop.permute.xlu0 %97  ;;  %1029 = vmatprep.subr.mxu0 %v1130_v19 }
 0x136   :  { %1006 = vmatprep.mubr.msk.f32.mxu0 %vm31_vm0, %v51_v50 }
 0x139   :  { %1007 = vmatmul.mubr.msk.f32.gmra.mxu0 %vm31_vm0, %v52_v52  ;;  %v103_v15 = vpop.permute.xlu0 %102 }
 0x13a   :  { %1009 = vmatprep.mubr.msk.f32.mxu0 %vm31_vm0, %v53_v53 }
 0x13d   :  { %1010 = vmatmul.mubr.msk.f32.gmra.mxu0 %vm31_vm0, %v54_v54  ;;  %v500_v38 = vpop.permute.xlu0 %499 }
 0x13e   :  { %1012 = vmatprep.mubr.msk.f32.mxu0 %vm31_vm0, %v55_v55 }
 0x141   :  { %1013 = vmatmul.mubr.msk.f32.gmra.mxu0 %vm31_vm0, %v56_v56 }
 0x142   :  { %1045 = vmatprep.mubr.msk.f32.mxu0 %vm1131_vm4, %v1130_v19 }
 0x1f5   :  { %v1005_v60 = vpop.f32.mrf.mxu0 }
 0x1f6   :  { %v201_v0 = vadd.f32 %v1005_v60, %v73_v57 }
 0x1f7   :  { %v195_v61 = vpop.f32.mrf.mxu0 }
 0x1f8   :  { %v196_v63 = vadd.f32 %v195_v61, %v68_v27 }
 0x1f9   :  { %v1008_v1 = vpop.f32.mrf.mxu0 }
 0x1fa   :  { %1017 = vmatprep.mubr.msk.f32.mxu1 %vm31_vm0, %v196_v63  ;;  %v211_v4 = vadd.f32 %v1008_v1, %v83_v59 }
 0x1fb   :  { %v205_v2 = vpop.f32.mrf.mxu0  ;;  %1018 = vmatmul.mubr.msk.f32.vlgmr.msra.gmra.mxu1 %vm31_vm0, %v201_v0 }
 0x1fc   :  { %v206_v3 = vadd.f32 %v205_v2, %v78_v58  ;;  %1049 = vmatpush3.msra.mxu1 %v480_v48 }
 0x1fd   :  { %v1011_v5 = vpop.f32.mrf.mxu0  ;;  %1076 = vmatprep.subr.mxu1 %v1130_v19 }
 0x1fe   :  { %1020 = vmatprep.mubr.msk.f32.mxu1 %vm31_vm0, %v206_v3  ;;  %v221_v12 = vadd.f32 %v1011_v5, %v93_v62 }
 0x1ff   :  { %v215_v10 = vpop.f32.mrf.mxu0  ;;  %1021 = vmatmul.mubr.msk.f32.gmra.mxu1 %vm31_vm0, %v211_v4 }
 0x200   :  { %v216_v11 = vadd.f32 %v215_v10, %v88_v7 }
 0x201   :  { %v1014_v13 = vpop.f32.mrf.mxu0 }
 0x202   :  { %1023 = vmatprep.mubr.msk.f32.mxu1 %vm31_vm0, %v216_v11  ;;  %v231_v17 = vadd.f32 %v1014_v13, %v103_v15 }
 0x203   :  { %v225_v14 = vpop.f32.mrf.mxu0  ;;  %1024 = vmatmul.mubr.msk.f32.gmra.mxu1 %vm31_vm0, %v221_v12 }
 0x204   :  { %v226_v16 = vadd.f32 %v225_v14, %v98_v6 }
 0x206   :  { %1026 = vmatprep.mubr.msk.f32.mxu1 %vm31_vm0, %v226_v16 }
 0x207   :  { %1027 = vmatmul.mubr.msk.f32.gmra.mxu1 %vm31_vm0, %v231_v17 }
 0x208   :  { %1050 = vmatprep.mubr.msk.f32.mxu1 %vm31_vm0, %v1211_v18 }
 0x20b   :  { %1051 = vmatmul.mubr.msk.f32.vlgmr.msra.gmra.mxu1 %vm31_vm0, %v50_v47  ;;  %v510_v47 = vpop.permute.xlu0 %509 }
 0x20c   :  { %1053 = vmatprep.mubr.msk.f32.mxu1 %vm31_vm0, %v51_v50  ;;  %v515_v50 = vpop.permute.xlu1 %514 }
 0x20f   :  { %1054 = vmatmul.mubr.msk.f32.gmra.mxu1 %vm31_vm0, %v52_v52 }
 0x210   :  { %1056 = vmatprep.mubr.msk.f32.mxu1 %vm31_vm0, %v53_v53  ;;  %v525_v57 = vpop.permute.xlu1 %524 }
 0x213   :  { %1057 = vmatmul.mubr.msk.f32.gmra.mxu1 %vm31_vm0, %v54_v54  ;;  %v520_v54 = vpop.permute.xlu0 %519 }
 0x214   :  { %1059 = vmatprep.mubr.msk.f32.mxu1 %vm31_vm0, %v55_v55  ;;  %v535_v62 = vpop.permute.xlu1 %534 }
 0x217   :  { %1060 = vmatmul.mubr.msk.f32.gmra.mxu1 %vm31_vm0, %v56_v56  ;;  %v530_v60 = vpop.permute.xlu0 %529 }
 0x218   :  { %1092 = vmatprep.mubr.msk.f32.mxu1 %vm1131_vm4, %v1130_v19 }
 0x21b   :  { %v376_v0 = vpop.permute.xlu0 %375 }
 0x2bb   :  { %v1019_v18 = vpop.f32.mrf.mxu1 }
 0x2bc   :  { %v338_v43 = vadd.f32 %v1019_v18, %v1307_v26 }
 0x2bd   :  { %v332_v20 = vpop.f32.mrf.mxu1 }
 0x2be   :  { %v333_v45 = vadd.f32 %v1307_v26, %v332_v20 }
 0x2bf   :  { %v1022_v21 = vpop.f32.mrf.mxu1 }
 0x2c0   :  { %v348_v37 = vadd.f32 %v1022_v21, %v1307_v26 }
 0x2c1   :  { %v342_v22 = vpop.f32.mrf.mxu1 }
 0x2c2   :  { %v343_v40 = vadd.f32 %v1307_v26, %v342_v22 }
 0x2c3   :  { %v1025_v23 = vpop.f32.mrf.mxu1 }
 0x2c4   :  { %v358_v32 = vadd.f32 %v1025_v23, %v1307_v26  ;;  %v803_v23 = vld [vmem:[%s1376_s5] sm:$0xf]  ;;  %s1132_s5 = smov [#allocation2]  }
 0x2c5   :  { %v352_v25 = vpop.f32.mrf.mxu1  ;;  %s899_s19 = sshll.u32 %s1132_s5, 4  ;;  %s900_s19 = int_to_ptr.vmem [resolvable:$true] %s899_s19 }
 0x2c6   :  { %v353_v35 = vadd.f32 %v1307_v26, %v352_v25  ;;  %v884_v25 = vmul.f32 %v1250_v41, %v1243_v33  ;;  %s1107_s20 = scalar_lea.vmem %s900_s19, 128  ;;  %p1112_p1 = scmp.lt.s32.totalorder %s900_s19, %s900_s19 }
 0x2c7   :  { %v1028_v27 = vpop.f32.mrf.mxu1  ;;  %p1108_p0 = scmp.ne.s32.totalorder %s900_s19, %s1107_s20  ;;  %p1113_p2 = scmp.lt.s32.totalorder %s1107_s20, %s1107_s20 }
 0x2c8   :  { %v368_v28 = vadd.f32 %v1028_v27, %v1307_v26  ;;  %v888_v27 = vand.u32 2147483648, %v1243_v33 }
 0x2c9   :  { %v362_v29 = vpop.f32.mrf.mxu1  ;;  %p1114_p3 = por %p1113_p2, %p1112_p1 }
 0x2ca   :  { %v363_v30 = vadd.f32 %v1307_v26, %v362_v29  ;;  %1030 = vmatpush3.msra.mxu0 %v368_v28  ;;  %v886_v28 = vsel %vm885_vm7, %v1243_v33, %v884_v25 }
 0x2cb   :  { %1031 = vmatprep.subr.mxu0 %v1130_v19  ;;  %v1052_v31 = vpop.f32.mrf.mxu1  ;;  %p1115_p4 = pnand %p1114_p3, %p1108_p0 }
 0x2cc   :  { %1032 = vmatpush3.msra.mxu0 %v363_v30  ;;  %v633_v52 = vadd.f32 %v1052_v31, %v505_v42  ;;  %v889_v31 = vsel %vm887_vm8, %v888_v27, %v886_v28 }
 0x2cd   :  { %1033 = vmatprep.subr.mxu0 %v1130_v19  ;;  %v627_v34 = vpop.f32.mrf.mxu1 }
 0x2ce   :  { %1034 = vmatpush3.msra.mxu0 %v358_v32  ;;  %v628_v48 = vadd.f32 %v627_v34, %v500_v38 }
 0x2cf   :  { %1035 = vmatprep.subr.mxu0 %v1130_v19  ;;  %v1055_v36 = vpop.f32.mrf.mxu1 }
 0x2d0   :  { %1036 = vmatpush3.msra.mxu0 %v353_v35  ;;  %v643_v56 = vadd.f32 %v1055_v36, %v515_v50 }
 0x2d1   :  { %1037 = vmatprep.subr.mxu0 %v1130_v19  ;;  %v637_v39 = vpop.f32.mrf.mxu1 }
 0x2d2   :  { %1038 = vmatpush3.msra.mxu0 %v348_v37  ;;  %v638_v53 = vadd.f32 %v637_v39, %v510_v47 }
 0x2d3   :  { %1039 = vmatprep.subr.mxu0 %v1130_v19  ;;  %v1058_v44 = vpop.f32.mrf.mxu1 }
 0x2d4   :  { %1040 = vmatpush3.msra.mxu0 %v343_v40 }
 0x2d5   :  { %1041 = vmatprep.subr.mxu0 %v1130_v19  ;;  %v647_v49 = vpop.f32.mrf.mxu1 }
 0x2d6   :  { %1042 = vmatpush3.msra.mxu0 %v338_v43  ;;  %v648_v58 = vadd.f32 %v647_v49, %v520_v54 }
 0x2d7   :  { %1043 = vmatprep.subr.mxu0 %v1130_v19  ;;  %v1061_v55 = vpop.f32.mrf.mxu1 }
 0x2d8   :  { %1044 = vmatpush3.msra.mxu0 %v333_v45  ;;  %v663_v63 = vadd.f32 %v1061_v55, %v535_v62 }
 0x2d9   :  { %1046 = vmatmul.mubr.msk.f32.vlgmr.msra.gmra.mxu0 %vm378_vm5, %v371_v46  ;;  %1062 = vmatprep.subr.mxu0 %v1233_v24  ;;  %v657_v59 = vpop.f32.mrf.mxu1 }
 0x2da   :  { %1063 = vmatpush3.msra.mxu0 %v1233_v24  ;;  %1064 = vmatprep.mubr.msk.f32.mxu0 %vm31_vm0, %v628_v48  ;;  %v653_v24 = vadd.f32 %v1058_v44, %v525_v57  ;;  %v658_v61 = vadd.f32 %v657_v59, %v530_v60 }
 0x2dd   :  { %1065 = vmatmul.mubr.msk.f32.vlgmr.msra.gmra.mxu0 %vm31_vm0, %v633_v52 }
 0x2de   :  { %1067 = vmatprep.mubr.msk.f32.mxu0 %vm31_vm0, %v638_v53 }
 0x2e1   :  { %1068 = vmatmul.mubr.msk.f32.gmra.mxu0 %vm31_vm0, %v643_v56 }
 0x2e2   :  { %1070 = vmatprep.mubr.msk.f32.mxu0 %vm31_vm0, %v648_v58 }
 0x2e5   :  { %1071 = vmatmul.mubr.msk.f32.gmra.mxu0 %vm31_vm0, %v653_v24 }
 0x2e6   :  { %1073 = vmatprep.mubr.msk.f32.mxu0 %vm31_vm0, %v658_v61 }
 0x2e9   :  { %1074 = vmatmul.mubr.msk.f32.gmra.mxu0 %vm31_vm0, %v663_v63 }
 0x399   :  { %v448_v1 = vpop.f32.mrf.mxu0 }
 0x39a   :  { %v449_v2 = vadd.f32 %v448_v1, %v376_v0 }
 0x39b   :  { %v1047_v3 = vpop.f32.mrf.mxu0 }
 0x39c   :  { %v459_v4 = vmul.f32 %v1259_v51, %v449_v2 }
 0x39d   :  { %v1066_v5 = vpop.f32.mrf.mxu0 }
 0x39e   :  { %v460_v6 = vadd.f32 %v459_v4, %v1192_v8  ;;  %v770_v21 = vadd.f32 %v1066_v5, %v1307_v26 }
 0x39f   :  { %v764_v7 = vpop.f32.mrf.mxu0 }
 0x3a0   :  { %462 = vst.msk [vmem:[#allocation2] sm:$0xf] %vm461_vm6, %v460_v6  ;;  %v765_v22 = vadd.f32 %v1307_v26, %v764_v7 }
 0x3a1   :  { %v1069_v10 = vpop.f32.mrf.mxu0 }
 0x3a2   :  { %v780_v18 = vadd.f32 %v1069_v10, %v1307_v26 }
 0x3a3   :  { %v774_v11 = vpop.f32.mrf.mxu0 }
 0x3a4   :  { %v775_v20 = vadd.f32 %v1307_v26, %v774_v11 }
 0x3a5   :  { %v1072_v12 = vpop.f32.mrf.mxu0 }
 0x3a6   :  { %v790_v51 = vadd.f32 %v1072_v12, %v1307_v26 }
 0x3a7   :  { %v784_v13 = vpop.f32.mrf.mxu0 }
 0x3a8   :  { %v785_v8 = vadd.f32 %v1307_v26, %v784_v13 }
 0x3a9   :  { %v1075_v14 = vpop.f32.mrf.mxu0 }
 0x3aa   :  { %v800_v15 = vadd.f32 %v1075_v14, %v1307_v26 }
 0x3ab   :  { %v794_v16 = vpop.f32.mrf.mxu0 }
 0x3ac   :  { %v795_v17 = vadd.f32 %v1307_v26, %v794_v16  ;;  %1077 = vmatpush3.msra.mxu1 %v800_v15  ;;  %v808_v26 = vpop.permute.xlu1 %807 }
 0x3ad   :  { %1078 = vmatprep.subr.mxu1 %v1130_v19 }
 0x3ae   :  { %1079 = vmatpush3.msra.mxu1 %v795_v17 }
 0x3af   :  { %1080 = vmatprep.subr.mxu1 %v1130_v19 }
 0x3b0   :  { %1081 = vmatpush3.msra.mxu1 %v790_v51 }
 0x3b1   :  { %1082 = vmatprep.subr.mxu1 %v1130_v19 }
 0x3b2   :  { %1083 = vmatpush3.msra.mxu1 %v785_v8 }
 0x3b3   :  { %1084 = vmatprep.subr.mxu1 %v1130_v19 }
 0x3b4   :  { %1085 = vmatpush3.msra.mxu1 %v780_v18 }
 0x3b5   :  { %1086 = vmatprep.subr.mxu1 %v1130_v19 }
 0x3b6   :  { %1087 = vmatpush3.msra.mxu1 %v775_v20 }
 0x3b7   :  { %1088 = vmatprep.subr.mxu1 %v1130_v19 }
 0x3b8   :  { %1089 = vmatpush3.msra.mxu1 %v770_v21 }
 0x3b9   :  { %1090 = vmatprep.subr.mxu1 %v1130_v19 }
 0x3ba   :  { %1091 = vmatpush3.msra.mxu1 %v765_v22 }
 0x3bb   :  { %1093 = vmatmul.mubr.msk.f32.vlgmr.msra.gmra.mxu1 %vm378_vm5, %v803_v23 }
 0x47b   :  { %v879_v29 = vpop.f32.mrf.mxu1 }
 0x47c   :  { %v880_v30 = vadd.f32 %v879_v29, %v808_v26 }
 0x47d   :  { %v1094_v32 = vpop.f32.mrf.mxu1 }
 0x47e   :  { %v890_v19 = vmul.f32 %v889_v31, %v880_v30 }
 0x480   :  { %v891_v34 = vadd.f32 %v890_v19, %v1194_v9 }
 0x482   :  { %893 = vst.msk [vmem:[#allocation2 + $0x4] sm:$0xf] %vm461_vm6, %v891_v34 }
 0x483   :  { %1118 = shalt.err (!%p1115_p4)
}
 0x484   :  { %s1133_s21 = smov 64   ;;  %s1134_s22 = smov 4  }
 0x485   :  { %905 = dma.vmem_to_hbm [thread:$0]  %s900_s19, 128, %s1378_s7, [#allocation3], %s1133_s21, %s1133_s21, %s1134_s22  }
 0x486   :  { %1127 = dma.done.wait [#allocation3], 128  }
 0x487   :  { %1128 = vsyncadd [#allocation3], 4294967168 }
 0x488   :  { %909 = vsyncpa [#allocation3], 1 }

</bundles_post_ra>
